<compile_context>
chip_gen: v7x
topology: tpu7x:2x2x1
jax: 0.10.0
libtpu: 0.0.40
codegen_flags: <defaults>
</compile_context>

<pallas_src>
import functools

import jax
import jax.numpy as jnp
from jax.experimental import pallas as pl
from jax.experimental.pallas import tpu as pltpu


def _round_up(n, m):
    return ((n + m - 1) // m) * m


def _rnn_seq_kernel(x_ref, h0_ref, w_ref, b_ref, out_ref, comb_ref, *, I, H, O):
    """One grid step == one timestep (for one batch block)."""
    t = pl.program_id(1)

    # Recurrence carry lives in VMEM scratch; (re)init at the start of each
    # batch block's time loop.
    @pl.when(t == 0)
    def _():
        comb_ref[:, I:] = h0_ref[...]

    # Current timestep input occupies the first I lanes of the combined buffer.
    comb_ref[:, :I] = x_ref[0]

    lhs = comb_ref[...]
    if w_ref.dtype != jnp.float32:          # optional bf16 weight path (v6e/v7x)
        lhs = lhs.astype(w_ref.dtype)

    # Single packed matmul replaces the 4 dots of the naive version; one fused
    # bias add.  Columns: [0:H] = new hidden, [H:H+O] = i2o logits, rest = 0.
    res = jnp.dot(lhs, w_ref[...], preferred_element_type=jnp.float32) + b_ref[...]

    # Carry the new hidden state to the next timestep.
    comb_ref[:, I:] = res[:, :H]

    # Numerically stable log_softmax over the O logit columns only, computed on
    # the full lane-dense row via masking so the output store stays unmasked.
    col = jax.lax.broadcasted_iota(jnp.int32, res.shape, dimension=1)
    is_logit = jnp.logical_and(col >= H, col < H + O)
    masked = jnp.where(is_logit, res, -jnp.inf)
    m = jnp.max(masked, axis=1, keepdims=True)
    lse = jnp.log(jnp.sum(jnp.exp(masked - m), axis=1, keepdims=True))
    logp = res - m - lse
    out_ref[0] = jnp.where(is_logit, logp, res).astype(out_ref.dtype)


def rnn_forward_sequence(xs, h0, w_i2h, b_i2h, w_i2o, b_i2o,
                         *, batch_block=None, param_dtype=jnp.float32):
    """Run the RNN cell over a whole sequence in one fused pallas_call.

    xs:    (T, B, I) float32 inputs, one per timestep.
    h0:    (B, H) initial hidden state.
    w_i2h: (H, I+H), b_i2h: (H,)   -- PyTorch nn.Linear layout.
    w_i2o: (O, I+H), b_i2o: (O,)

    Returns (log_probs, hiddens) with shapes (T, B, O) and (T, B, H); the final
    hidden state of the recurrence is hiddens[-1].
    """
    T, B, I = xs.shape
    H = h0.shape[1]
    O = w_i2o.shape[0]
    IH = I + H
    NP = _round_up(H + O, 128)  # lane-dense packed output width

    # Hoisted, time-invariant weight packing (done exactly once per sequence):
    # cat([x, h]) @ W.T == [x, h] @ W.T_packed ; the two linear layers share one
    # (I+H, NP) slab: columns [0:H] -> i2h, [H:H+O] -> i2o, rest zero padding.
    W_all = jnp.zeros((IH, NP), jnp.float32)
    W_all = W_all.at[:, :H].set(w_i2h.T).at[:, H:H + O].set(w_i2o.T)
    b_all = jnp.zeros((1, NP), jnp.float32)
    b_all = b_all.at[0, :H].set(b_i2h).at[0, H:H + O].set(b_i2o)
    if param_dtype != jnp.float32:
        W_all = W_all.astype(param_dtype)   # e.g. bf16 weights on v6e/v7x

    # Optional batch split across TensorCores (v7x megacore).  Batch blocks must
    # either cover the whole batch or be a multiple of 8 (sublane constraint).
    if batch_block is None:
        bb = B
    else:
        assert B % batch_block == 0 and (batch_block == B or batch_block % 8 == 0)
        bb = batch_block
    nb = B // bb

    kernel = functools.partial(_rnn_seq_kernel, I=I, H=H, O=O)

    out = pl.pallas_call(
        kernel,
        out_shape=jax.ShapeDtypeStruct((T, B, NP), jnp.float32),
        grid_spec=pltpu.PrefetchScalarGridSpec(
            num_scalar_prefetch=0,
            grid=(nb, T),                                   # time is innermost
            in_specs=[
                pl.BlockSpec((1, bb, I), lambda b, t: (t, b, 0)),   # x_t
                pl.BlockSpec((bb, H), lambda b, t: (b, 0)),         # h0
                pl.BlockSpec((IH, NP), lambda b, t: (0, 0)),        # packed W (resident)
                pl.BlockSpec((1, NP), lambda b, t: (0, 0)),         # packed bias (resident)
            ],
            out_specs=pl.BlockSpec((1, bb, NP), lambda b, t: (t, b, 0)),
            scratch_shapes=[pltpu.VMEM((bb, IH), jnp.float32)],      # [x_t | h_t] carry
        ),
        compiler_params=pltpu.CompilerParams(
            dimension_semantics=("parallel", "arbitrary")),
    )(xs, h0, W_all, b_all)

    hidden_seq = out[:, :, :H]
    logp_seq = out[:, :, H:H + O]
    return logp_seq, hidden_seq


def init_linear_params(key, in_features, out_features):
    """Deterministic PyTorch-style nn.Linear init: U(-k, k), k = 1/sqrt(fan_in)."""
    k = 1.0 / jnp.sqrt(jnp.float32(in_features))
    kw, kb = jax.random.split(key)
    w = jax.random.uniform(kw, (out_features, in_features), jnp.float32, -k, k)
    b = jax.random.uniform(kb, (out_features,), jnp.float32, -k, k)
    return w, b


if __name__ == "__main__":
    # Small shapes consistent with the module's forward (char-RNN style).
    T, B = 8, 2
    INPUT_SIZE, HIDDEN_SIZE, OUTPUT_SIZE = 16, 32, 8

    root = jax.random.PRNGKey(0)
    k_x, k_i2h, k_i2o = jax.random.split(root, 3)

    xs = jax.random.normal(k_x, (T, B, INPUT_SIZE), jnp.float32)
    h0 = jnp.zeros((B, HIDDEN_SIZE), jnp.float32)          # RNN.initHidden()

    w_i2h, b_i2h = init_linear_params(k_i2h, INPUT_SIZE + HIDDEN_SIZE, HIDDEN_SIZE)
    w_i2o, b_i2o = init_linear_params(k_i2o, INPUT_SIZE + HIDDEN_SIZE, OUTPUT_SIZE)

    logp_seq, hid_seq = rnn_forward_sequence(xs, h0, w_i2h, b_i2h, w_i2o, b_i2o)
    jax.block_until_ready((logp_seq, hid_seq))

    # Pure-JAX reference: apply the PyTorch module's forward step by step.
    h = h0
    ref_logp, ref_hid = [], []
    for t in range(T):
        combined = jnp.concatenate([xs[t], h], axis=1)
        h = combined @ w_i2h.T + b_i2h
        logits = combined @ w_i2o.T + b_i2o
        ref_logp.append(jax.nn.log_softmax(logits, axis=1))
        ref_hid.append(h)
    ref_logp = jnp.stack(ref_logp)
    ref_hid = jnp.stack(ref_hid)

    assert jnp.allclose(hid_seq, ref_hid, atol=1e-4), "hidden mismatch"
    assert jnp.allclose(logp_seq, ref_logp, atol=1e-4), "log_softmax output mismatch"

    print("KERNEL_OK")
</pallas_src>

<mosaic_0001>
module attributes {stable_mosaic.version = 11 : i64} {
  func.func @_rnn_seq_kernel(%arg0: i32, %arg1: i32, %arg2: memref<1x2x16xf32, #tpu.memory_space<vmem>>, %arg3: memref<2x32xf32, #tpu.memory_space<vmem>>, %arg4: memref<48x128xf32, #tpu.memory_space<vmem>>, %arg5: memref<1x128xf32, #tpu.memory_space<vmem>>, %arg6: memref<1x2x128xf32, #tpu.memory_space<vmem>>, %arg7: memref<2x48xf32, #tpu.memory_space<vmem>>) attributes {dimension_semantics = [#tpu.dimension_semantics<parallel>, #tpu.dimension_semantics<arbitrary>], iteration_bounds = array<i64: 1, 8>, scalar_prefetch = 0 : i64, scratch_operands = 1 : i64, tpu.core_type = #tpu.core_type<tc>, window_params = [{transform_indices = @transform_0, window_bounds = array<i64: 1, 2, 16>}, {transform_indices = @transform_1, window_bounds = array<i64: 2, 32>}, {pipeline_mode = #tpu.pipeline_mode<synchronous>, transform_indices = @transform_2, window_bounds = array<i64: 48, 128>}, {pipeline_mode = #tpu.pipeline_mode<synchronous>, transform_indices = @transform_3, window_bounds = array<i64: 1, 128>}, {transform_indices = @transform_4, window_bounds = array<i64: 1, 2, 128>}]} {
    %c0_i32 = arith.constant 0 : i32
    %0 = arith.cmpi eq, %arg1, %c0_i32 : i32
    %1 = arith.extui %0 : i1 to i32
    %c0_i32_0 = arith.constant 0 : i32
    %2 = arith.cmpi ne, %1, %c0_i32_0 : i32
    scf.if %2 {
      %c0_18 = arith.constant 0 : index
      %c0_19 = arith.constant 0 : index
      %38 = vector.load %arg3[%c0_18, %c0_19] : memref<2x32xf32, #tpu.memory_space<vmem>>, vector<2x32xf32>
      %c0_20 = arith.constant 0 : index
      %c16_21 = arith.constant 16 : index
      %39 = vector.load %arg7[%c0_20, %c16_21] : memref<2x48xf32, #tpu.memory_space<vmem>>, vector<2x32xf32>
      tpu.vector_store %arg7[%c0_20, %c16_21], %38 {strides = array<i32>} : memref<2x48xf32, #tpu.memory_space<vmem>>, vector<2x32xf32>,
    } else {
    }
    %c0 = arith.constant 0 : index
    %c0_1 = arith.constant 0 : index
    %c0_2 = arith.constant 0 : index
    %3 = vector.load %arg2[%c0, %c0_1, %c0_2] : memref<1x2x16xf32, #tpu.memory_space<vmem>>, vector<1x2x16xf32>
    %4 = vector.shape_cast %3 : vector<1x2x16xf32> to vector<2x16xf32>
    %c0_3 = arith.constant 0 : index
    %c0_4 = arith.constant 0 : index
    %5 = vector.load %arg7[%c0_3, %c0_4] : memref<2x48xf32, #tpu.memory_space<vmem>>, vector<2x16xf32>
    tpu.vector_store %arg7[%c0_3, %c0_4], %4 {strides = array<i32>} : memref<2x48xf32, #tpu.memory_space<vmem>>, vector<2x16xf32>,
    %c0_5 = arith.constant 0 : index
    %c0_6 = arith.constant 0 : index
    %6 = vector.load %arg7[%c0_5, %c0_6] : memref<2x48xf32, #tpu.memory_space<vmem>>, vector<2x48xf32>
    %c0_7 = arith.constant 0 : index
    %c0_8 = arith.constant 0 : index
    %7 = vector.load %arg4[%c0_7, %c0_8] : memref<48x128xf32, #tpu.memory_space<vmem>>, vector<48x128xf32>
    %cst = arith.constant dense<0.000000e+00> : vector<2x128xf32>
    %8 = tpu.matmul %6, %7, %cst {dimension_numbers = #tpu.dot_dimension_numbers<[1], [0], [0], [1], [0, 0, 1, 1], [], []>} : vector<2x48xf32>, vector<48x128xf32>, vector<2x128xf32> -> vector<2x128xf32>
    %c0_9 = arith.constant 0 : index
    %c0_10 = arith.constant 0 : index
    %9 = vector.load %arg5[%c0_9, %c0_10] : memref<1x128xf32, #tpu.memory_space<vmem>>, vector<1x128xf32>
    %10 = vector.broadcast %9 : vector<1x128xf32> to vector<2x128xf32>
    %11 = arith.addf %8, %10 : vector<2x128xf32>
    %12 = vector.extract_strided_slice %11 {offsets = [0, 0], sizes = [2, 32], strides = [1, 1]} : vector<2x128xf32> to vector<2x32xf32>
    %c0_11 = arith.constant 0 : index
    %c16 = arith.constant 16 : index
    %13 = vector.load %arg7[%c0_11, %c16] : memref<2x48xf32, #tpu.memory_space<vmem>>, vector<2x32xf32>
    tpu.vector_store %arg7[%c0_11, %c16], %12 {strides = array<i32>} : memref<2x48xf32, #tpu.memory_space<vmem>>, vector<2x32xf32>,
    %14 = tpu.iota {dimensions = array<i32: 1>} : vector<2x128xi32>
    %c32_i32 = arith.constant 32 : i32
    %15 = vector.broadcast %c32_i32 : i32 to vector<2x128xi32>
    %16 = arith.cmpi sge, %14, %15 : vector<2x128xi32>
    %c40_i32 = arith.constant 40 : i32
    %17 = vector.broadcast %c40_i32 : i32 to vector<2x128xi32>
    %18 = arith.cmpi slt, %14, %17 : vector<2x128xi32>
    %19 = arith.andi %16, %18 : vector<2x128xi1>
    %cst_12 = arith.constant 0xFF800000 : f32
    %20 = vector.broadcast %cst_12 : f32 to vector<2x128xf32>
    %21 = arith.select %19, %11, %20 : vector<2x128xi1>, vector<2x128xf32>
    %cst_13 = arith.constant dense<0xFF800000> : vector<2xf32>
    %22 = vector.multi_reduction <maximumf>, %21, %cst_13 [1] : vector<2x128xf32> to vector<2xf32>
    %23 = vector.shape_cast %22 : vector<2xf32> to vector<2x1xf32>
    %24 = vector.broadcast %23 : vector<2x1xf32> to vector<2x128xf32>
    %25 = arith.subf %21, %24 : vector<2x128xf32>
    %26 = math.exp %25 : vector<2x128xf32>
    %cst_14 = arith.constant dense<0.000000e+00> : vector<2xf32>
    %27 = vector.multi_reduction <add>, %26, %cst_14 [1] : vector<2x128xf32> to vector<2xf32>
    %28 = vector.shape_cast %27 : vector<2xf32> to vector<2x1xf32>
    %29 = math.log %28 : vector<2x1xf32>
    %30 = vector.broadcast %23 : vector<2x1xf32> to vector<2x128xf32>
    %31 = arith.subf %11, %30 : vector<2x128xf32>
    %32 = vector.broadcast %29 : vector<2x1xf32> to vector<2x128xf32>
    %33 = arith.subf %31, %32 : vector<2x128xf32>
    %34 = arith.select %19, %33, %11 : vector<2x128xi1>, vector<2x128xf32>
    %c0_15 = arith.constant 0 : index
    %c0_16 = arith.constant 0 : index
    %c0_17 = arith.constant 0 : index
    %35 = vector.load %arg6[%c0_15, %c0_16, %c0_17] : memref<1x2x128xf32, #tpu.memory_space<vmem>>, vector<1x2x128xf32>
    %36 = vector.shape_cast %35 : vector<1x2x128xf32> to vector<2x128xf32>
    %37 = vector.shape_cast %34 : vector<2x128xf32> to vector<1x2x128xf32>
    tpu.vector_store %arg6[%c0_15, %c0_16, %c0_17], %37 {strides = array<i32>} : memref<1x2x128xf32, #tpu.memory_space<vmem>>, vector<1x2x128xf32>,
    return
  }
  func.func @transform_0(%arg0: i32, %arg1: i32) -> (i32, i32, i32) {
    %c0_i32 = arith.constant 0 : i32
    %c0_i32_0 = arith.constant 0 : i32
    return %arg1, %arg0, %c0_i32 : i32, i32, i32
  }
  func.func @transform_1(%arg0: i32, %arg1: i32) -> (i32, i32) {
    %c0_i32 = arith.constant 0 : i32
    %c0_i32_0 = arith.constant 0 : i32
    return %arg0, %c0_i32 : i32, i32
  }
  func.func @transform_2(%arg0: i32, %arg1: i32) -> (i32, i32) {
    %c0_i32 = arith.constant 0 : i32
    %c0_i32_0 = arith.constant 0 : i32
    %c0_i32_1 = arith.constant 0 : i32
    return %c0_i32, %c0_i32_0 : i32, i32
  }
  func.func @transform_3(%arg0: i32, %arg1: i32) -> (i32, i32) {
    %c0_i32 = arith.constant 0 : i32
    %c0_i32_0 = arith.constant 0 : i32
    %c0_i32_1 = arith.constant 0 : i32
    return %c0_i32, %c0_i32_0 : i32, i32
  }
  func.func @transform_4(%arg0: i32, %arg1: i32) -> (i32, i32, i32) {
    %c0_i32 = arith.constant 0 : i32
    %c0_i32_0 = arith.constant 0 : i32
    return %arg1, %arg0, %c0_i32 : i32, i32, i32
  }
}

</mosaic_0001>

<bundles_post_ra>
// kernel: tpu_custom_call.1
= control target key start
LH: loop header
LB: loop body
LE: loop exit
PB: predicated region body
PF: predicated region fallthrough
CT: control target
= control target key end

     0   :  { %9 = vsyncpa [#allocation4], 0  ;;  %s1058_s0 = inlined_call_operand.hbm [shape: f32[8,2,16], index: 0, kind: input, shape index: {}]   ;;  %s1059_s1 = inlined_call_operand.vmem [shape: f32[2,32], index: 1, kind: input, shape index: {}]   ;;  %s1060_s2 = inlined_call_operand.hbm [shape: f32[48,128], index: 2, kind: input, shape index: {}]   ;;  %s1061_s3 = inlined_call_operand.vmem [shape: f32[1,128], index: 3, kind: input, shape index: {}]   ;;  %s1062_s4 = inlined_call_operand.hbm [shape: f32[8,2,128], index: 4, kind: output, shape index: {}]  }
   0x1   :  { %11 = vsyncpa [#allocation4 + $0x1], 0 }
   0x2   :  { %12 = vsyncpa [#allocation7], 0 }
   0x3   :  { %13 = vsyncpa [#allocation5], 0 }
   0x4   :  { %15 = vsyncpa [#allocation5 + $0x1], 0  ;;  %s827_s15 = smov 0   ;;  %s829_s16 = smov 0  }
   0x5   :  { %s831_s17 = smov 0   ;;  %s833_s18 = smov 0  }
   0x6   :  { %s835_s19 = smov 0   ;;  %s837_s20 = smov 0  }
   0x7 LB: > { %s512_s21 = sadd.s32 4294967295, %s790_s20   ;;  %s513_s22 = sadd.s32 4294967294, %s790_s20   ;;  %s790_s20 = sphi %s837_s20, %s21_s20   ;;  %s786_s19 = sphi %s835_s19, %s1087_s19   ;;  %s782_s18 = sphi %s833_s18, %s1086_s18   ;;  %s778_s17 = sphi %s831_s17, %s1085_s17   ;;  %s774_s16 = sphi %s829_s16, %s1084_s16   ;;  %s770_s15 = sphi %s827_s15, %s1083_s15  }
   0x8   : > { %p55_p0 = scmp.ne.s32.totalorder %s774_s16, %s770_s15  ;;  %p861_p1 = scmp.eq.s32.totalorder %s512_s21, 0 }
   0x9   : > { %p865_p2 = scmp.eq.s32.totalorder %s512_s21, 7  ;;  %p155_p3 = scmp.eq.s32.totalorder %s513_s22, 7 }
   0xa   : > { %s1067_s23 = scalar_select %p861_p1, 1, 0 }
   0xb   : > { %s1068_s24 = scalar_select %p865_p2, 1, 0 }
   0xc   : > { %p871_p4 = por %p861_p1, %p55_p0  ;;  %p514_p5 = scmp.ge.s32.totalorder %s790_s20, 1 }
   0xd   : > { %p876_p6 = por %p155_p3, %p55_p0  ;;  %p162_p7 = scmp.lt.s32.totalorder %s790_s20, 9 }
   0xe   : > { %s1069_s25 = scalar_select %p871_p4, 1, 0 }
   0xf   : > { %s1070_s26 = scalar_select %p876_p6, 1, 0 }
  0x10   : > { %p881_p8 = pnand %p514_p5, %p162_p7  ;;  %s792_s28 = smov [#allocation6]  }
  0x11   : > { %s181_s29 = sshll.u32 %s792_s28, 4  ;;  %s30_s5 = sadd.s32 1, %s786_s19  ;;  %s182_s29 = int_to_ptr.vmem [resolvable:$true] %s181_s29 }
  0x12   : > { %s1071_s27 = scalar_select %p881_p8, 1, 0 }
  0x13   : > { %p570_p9 = pneg %p881_p8  ;;  %s646_s8 = scalar_lea.hbm %s1060_s2, 768 }
  0x14   : > { %p647_p11 = scmp.ne.s32.totalorder %s1060_s2, %s646_s8  ;;  %p653_p3 = scmp.lt.u32.totalorder %s646_s8, %s1060_s2 }
  0x15   : > { %p889_p10 = pnand %p570_p9, %p861_p1 }
  0x17   : > { %p648_p12 = pneg %p889_p10 }
  0x19   : > { %p649_p13 = pnand %p648_p12, %p647_p11 }
  0x1b   : > { %p650_p0 = pneg %p649_p13 }
  0x1d   : > { %p655_p5 = pnand %p653_p3, %p650_p0 }
  0x1f   : > { %658 = shalt.err (!%p655_p5)
}
  0x20   : > { %s659_s13 = scalar_lea.vmem %s182_s29, 768  ;;  %p667_p1 = scmp.lt.s32.totalorder %s182_s29, %s182_s29 }
  0x21   : > { %p660_p7 = scmp.ne.s32.totalorder %s182_s29, %s659_s13  ;;  %p668_p4 = scmp.lt.s32.totalorder %s659_s13, %s659_s13 }
  0x23   : > { %p662_p9 = pnand %p660_p7, %p648_p12  ;;  %p669_p8 = por %p668_p4, %p667_p1 }
  0x25   : > { %p663_p6 = pneg %p662_p9 }
  0x27   : > { %p670_p2 = pnand %p669_p8, %p663_p6 }
  0x29   : > { %673 = shalt.err (!%p670_p2)
}
  0x2a   : > { %s793_s14 = smov 128   ;;  %s794_s21 = smov 8  }
  0x2b   : > { %573 = dma.hbm_to_vmem [thread:$0]  (!%p889_p10), %s1060_s2, 768, %s182_s29, [#allocation7], %s793_s14, %s793_s14, %s794_s21  }
  0x2c   : > { %p31_p1 = scmp.ge.s32.totalorder %s30_s5, 8  ;;  %s42_s6 = sadd.s32 1, %s778_s17 }
  0x2d   : > { %p49_p2 = scmp.ne.s32.totalorder %s778_s17, %s774_s16  ;;  %p50_p4 = scmp.eq.s32.totalorder %s790_s20, 0 }
  0x2e   : > { %s1089_s5 = smov (%p31_p1, %s30_s5), 0  ;;  %p1074_p8 = scmp.ne.s32.totalorder %s1068_s24, 0 }
  0x2f   : > { %p916_p6 = por %p50_p4, %p49_p2  ;;  %s37_s30 = ssub.s32 %s786_s19, %s1089_s5 }
  0x30   : > { %p922_p11 = por %p1074_p8, %p49_p2  ;;  %p583_p12 = scmp.lt.s32.totalorder %s790_s20, 8 }
  0x31   : > { %p40_p10 = scmp.eq.s32.totalorder %s37_s30, 0  ;;  %s198_s29 = sand.u32 1, %s778_s17  }
  0x32   : > { %s518_s9 = sshll.u32 %s198_s29, 1  ;;  %s519_s11 = sshll.u32 %s786_s19, 5 }
  0x33   : > { %s931_s10 = scalar_select %p40_p10, %s778_s17, %s42_s6  }
  0x34   : > { %s937_s14 = scalar_lea.hbm %s1058_s0, %s519_s11  ;;  %s202_s24 = scalar_lea.vmem [#allocation3], %s518_s9 }
  0x35   : > { %s210_s21 = sshll.u32 %s202_s24, 4  ;;  %p943_p13 = pnand %p583_p12, %p916_p6  ;;  %s939_s21 = int_to_ptr.vmem [resolvable:$true] %s210_s21 }
  0x36   : > { %s199_s28 = scalar_lea.sflag [#allocation4], %s198_s29  ;;  %s674_s6 = scalar_lea.hbm %s937_s14, 32 }
  0x37   : > { %p675_p0 = scmp.ne.s32.totalorder %s937_s14, %s674_s6  ;;  %p676_p3 = pneg %p943_p13 }
  0x38   : > { %s679_s11 = scalar_lea.hbm %s1058_s0, 256  ;;  %p680_p9 = scmp.lt.u32.totalorder %s937_s14, %s1058_s0 }
  0x39   : > { %p677_p5 = pnand %p676_p3, %p675_p0  ;;  %p681_p1 = scmp.lt.u32.totalorder %s679_s11, %s674_s6 }
  0x3a   : > { %p683_p4 = scmp.lt.u32.totalorder %s674_s6, %s937_s14 }
  0x3b   : > { %p678_p7 = pneg %p677_p5  ;;  %p682_p2 = por %p681_p1, %p680_p9 }
  0x3d   : > { %p684_p6 = por %p683_p4, %p682_p2 }
  0x3f   : > { %p685_p8 = pnand %p684_p6, %p678_p7 }
  0x41   : > { %688 = shalt.err (!%p685_p8)
}
  0x42   : > { %s689_s29 = scalar_lea.vmem %s939_s21, 32  ;;  %s795_s13 = smov [#allocation3]  }
  0x43   : > { %p690_p12 = scmp.ne.s32.totalorder %s939_s21, %s689_s29  ;;  %s694_s24 = sshll.u32 %s795_s13, 4  ;;  %s695_s24 = int_to_ptr.vmem [resolvable:$false] %s694_s24 }
  0x44   : > { %s696_s30 = scalar_lea.vmem %s695_s24, 64  ;;  %p697_p5 = scmp.lt.s32.totalorder %s939_s21, %s695_s24 }
  0x45   : > { %p692_p10 = pnand %p690_p12, %p676_p3  ;;  %p698_p9 = scmp.lt.s32.totalorder %s696_s30, %s689_s29 }
  0x47   : > { %p693_p0 = pneg %p692_p10  ;;  %p699_p1 = por %p698_p9, %p697_p5 }
  0x49   : > { %p700_p2 = pnand %p699_p1, %p693_p0 }
  0x4b   : > { %703 = shalt.err (!%p700_p2)
}
  0x4c   : > { %577 = dma.hbm_to_vmem [thread:$0]  (!%p943_p13), %s937_s14, 32, %s939_s21, %s199_s28  }
  0x4d   : > { %p1077_p7 = scmp.ne.s32.totalorder %s1071_s27, 0 }
  0x4e   : > { %s975_s6 = sand.u32 (!%p1077_p7), 1, %s774_s16   ;;  %p1078_p3 = scmp.ne.s32.totalorder (!%p1077_p7), %s1069_s25, 0 }
  0x4f   : > { %219 = sbr.rel (%p1077_p7) target bundleno = 768 (0x300), region = 36  ;;  %s521_s9 = sshll.u32 (!%p1077_p7), %s975_s6, 1 }
  0x50   : > { %s222_s11 = scalar_lea.sflag (!%p1077_p7), [#allocation4], %s975_s6  ;;  %s225_s7 = scalar_lea.vmem (!%p1077_p7), [#allocation3], %s521_s9 }
  0x56   : > { %757 = dma.done.wait (%p1078_p3), %s222_s11, 32  }
  0x57   : > { %759 = vsyncadd (%p1078_p3), %s222_s11, 4294967264  ;;  %p1079_p4 = scmp.ne.s32.totalorder %s1067_s23, 0 }
  0x59   : > { %761 = dma.done.wait (%p1079_p4), [#allocation7], 768  }
  0x5a   : > { %763 = vsyncadd (%p1079_p4), [#allocation7], 4294966528  ;;  %s987_s27 = scalar_lea.vmem [#allocation8], %s521_s9  ;;  %p524_p13 = scmp.ne.s32.totalorder %s782_s18, 0 }
  0x5b   : > { %v266_v0 = vld [vmem:[%s1059_s1] sm:$0x3] (!%p524_p13)  ;;  %s796_s22 = smov (!%p524_p13), 16   ;;  %vm271_vm0 = vcmask (!%p524_p13), 386176  }
  0x5c   : > { %265 = sbr.rel (%p524_p13) target bundleno = 208 (0xd0), region = 48  ;;  %268 = vrot.lane.b32.xlu0 (!%p524_p13), %v266_v0, %s796_s22 }
  0xce   : > { %v269_v1 = vpop.permute.xlu0 %268 }
  0xcf   : > { %272 = vst.msk [vmem:[#allocation2] sm:$0x3] %vm271_vm0, %v269_v1 }
  0xd0 PF: > { %v277_v2 = vld [vmem:[#allocation6] sm:$0xff]  ;;  %v278_v3 = vld [vmem:[#allocation6 + $0x8] sm:$0xff]  ;;  %v279_v4 = vld [vmem:[#allocation6 + $0x10] sm:$0xff]  ;;  %v797_v5 = vmov 0.0|0.0   ;;  %vm798_vm1 = vmmov 0   ;;  %v799_v8 = vmov 0.0   ;;  %v370_v15 = vlaneseq }
  0xd1   : > { %553 = vmatprep.subr.bf16.mxu0 %v797_v5  ;;  %v554_v6 = vpack.c.bf16 %v278_v3, %v277_v2  ;;  %v280_v7 = vld [vmem:[#allocation6 + $0x18] sm:$0xff]  ;;  %550 = vmatprep.mubr.msk.f32.mxu0 %vm798_vm1, %v799_v8  ;;  %vm274_vm2 = vcmask 123904   ;;  %v281_v11 = vld [vmem:[#allocation6 + $0x20] sm:$0xff]  ;;  %v282_v12 = vld [vmem:[#allocation6 + $0x28] sm:$0xff]  ;;  %vm290_vm3 = vcmask 392192   ;;  %vm376_vm7 = vcmask 1041408  }
  0xd2   : > { %v273_v9 = vld [vmem:[%s225_s7] sm:$0x3]  ;;  %v557_v10 = vpack.c.bf16 %v280_v7, %v279_v4  ;;  %v560_v13 = vpack.c.bf16 %v282_v12, %v281_v11  ;;  %v371_v16 = vand.u32 127, %v370_v15  ;;  %v525_v17 = vld [vmem:[%s1061_s3] ss:$0 sm:$0xff]  ;;  %s800_s28 = smov 16  }
  0xd3   : > { %555 = vmatpush3.bf16.msra.mxu0 %v554_v6  ;;  %275 = vst.msk [vmem:[#allocation2] sm:$0x3] %vm274_vm2, %v273_v9  ;;  %vm368_vm8 = vcmask 386176   ;;  %s528_s12 = sshll.u32 %s782_s18, 5  ;;  %s407_s29 = sshll.u32 %s987_s27, 4  ;;  %s1009_s29 = int_to_ptr.vmem [resolvable:$true] %s407_s29 }
  0xd4   : > { %556 = vmatprep.subr.bf16.mxu0 %v797_v5  ;;  %vm372_vm4 = vcmp.ge.s32.totalorder %v371_v16, 32  ;;  %vm373_vm5 = vcmp.lt.s32.totalorder %v371_v16, 40  ;;  %s1007_s30 = scalar_lea.hbm %s1062_s4, %s528_s12  ;;  %s393_s9 = scalar_lea.sflag [#allocation5], %s975_s6 }
  0xd5   : > { %vm996_vm6 = vmand %vm372_vm4, %vm373_vm5  ;;  %s704_s11 = scalar_lea.vmem %s1009_s29, 32  ;;  %s801_s18 = smov [#allocation8]  }
  0xd6   : > { %p705_p6 = scmp.ne.s32.totalorder %s1009_s29, %s704_s11  ;;  %s708_s7 = sshll.u32 %s801_s18, 4  ;;  %s709_s7 = int_to_ptr.vmem [resolvable:$false] %s708_s7 }
  0xd7   : > { %558 = vmatpush3.bf16.msra.mxu0 %v557_v10  ;;  %s710_s14 = scalar_lea.vmem %s709_s7, 64  ;;  %p711_p10 = scmp.lt.s32.totalorder %s1009_s29, %s709_s7 }
  0xd8   : > { %559 = vmatprep.subr.bf16.mxu0 %v797_v5  ;;  %p706_p8 = pnand %p705_p6, %p922_p11  ;;  %p712_p0 = scmp.lt.s32.totalorder %s710_s14, %s704_s11 }
  0xda   : > { %v276_v14 = vld [vmem:[#allocation2] sm:$0x3]  ;;  %p707_p12 = pneg %p706_p8  ;;  %p713_p5 = por %p712_p0, %p711_p10 }
  0xdb   : > { %561 = vmatpush3.bf16.msra.mxu0 %v560_v13 }
  0xdc   : > { %p714_p9 = pnand %p713_p5, %p707_p12 }
  0xde   : > { %551 = vmatmul.mubr.msk.f32.vlgmr.msra.gmra.mrb[0].mxu0 %vm290_vm3, %v276_v14 }
 0x1b1   : > { %v360_v18 = vpop.f32.mrb[0].mxu0 }
 0x1b2   : > { %v361_v20 = vadd.f32 %v525_v17, %v360_v18  ;;  %v552_v21 = vpop.f32.mrb[1].mxu0 }
 0x1b4   : > { %365 = vrot.lane.b32.xlu1 %v361_v20, %s800_s28  ;;  %v375_v22 = vsel %vm996_vm6, %v361_v20, -inf }
 0x1b5   : > { %v377_v23 = vsel %vm376_vm7, %v375_v22, -inf }
 0x1b6   : > { %378 = vmax.xlane.f32.xlu0 %v377_v23 }
 0x226   : > { %v366_v24 = vpop.permute.xlu1 %365 }
 0x227   : > { %369 = vst.msk [vmem:[#allocation2] sm:$0x3] %vm368_vm8, %v366_v24 }
 0x243   : > { %v379_v25 = vpop.xlane.xlu0 %378 }
 0x244   : > { %v380_v26 = vsub.f32 %v375_v22, %v379_v25  ;;  %v388_v32 = vsub.f32 %v361_v20, %v379_v25 }
 0x246   : > { %v381_v27 = vmul.f32 1.442695, %v380_v26 }
 0x248   : > { %642 = vpow2.f32 %v381_v27 }
 0x252   : > { %v643_v28 = vpop.eup %642 }
 0x253   : > { %v383_v29 = vsel %vm376_vm7, %v643_v28, 0.0 }
 0x254   : > { %384 = vadd.xlane.f32.xlu0 %v383_v29 }
 0x2e1   : > { %v385_v30 = vpop.xlane.xlu0 %384 }
 0x2e2   : > { %644 = vlog2.f32 %v385_v30 }
 0x2ec   : > { %v645_v31 = vpop.eup %644 }
 0x2ed   : > { %v387_v33 = vmul.f32 0.6931472, %v645_v31 }
 0x2ef   : > { %v389_v34 = vsub.f32 %v388_v32, %v387_v33 }
 0x2f1   : > { %v390_v35 = vsel %vm996_vm6, %v389_v34, %v361_v20 }
 0x2f2   : > { %391 = vst [vmem:[%s987_s27] sm:$0x3] %v390_v35 }
 0x2f3   : > { %717 = shalt.err (!%p714_p9)
}
 0x2f4   : > { %s718_s6 = scalar_lea.hbm %s1007_s30, 32  ;;  %s722_s22 = scalar_lea.hbm %s1062_s4, 256 }
 0x2f5   : > { %p719_p1 = scmp.ne.s32.totalorder %s1007_s30, %s718_s6  ;;  %p723_p3 = scmp.lt.u32.totalorder %s1007_s30, %s1062_s4 }
 0x2f6   : > { %p724_p4 = scmp.lt.u32.totalorder %s722_s22, %s718_s6  ;;  %p726_p6 = scmp.lt.u32.totalorder %s718_s6, %s1007_s30 }
 0x2f7   : > { %p720_p2 = pnand %p719_p1, %p922_p11 }
 0x2f8   : > { %p725_p13 = por %p724_p4, %p723_p3 }
 0x2f9   : > { %p721_p7 = pneg %p720_p2 }
 0x2fa   : > { %p727_p8 = por %p726_p6, %p725_p13 }
 0x2fc   : > { %p728_p12 = pnand %p727_p8, %p721_p7 }
 0x2fe   : > { %731 = shalt.err (!%p728_p12)
}
 0x2ff   : > { %568 = dma.vmem_to_hbm [thread:$0]  (%p922_p11), %s1009_s29, 32, %s1007_s30, %s393_s9  }
 0x300 PF: > { %p585_p10 = scmp.ge.s32.totalorder %s790_s20, 2  ;;  %s419_s28 = sand.u32 1, %s770_s15  }
 0x301   : > { %p1082_p0 = scmp.ne.s32.totalorder %s1070_s26, 0  ;;  %s420_s12 = scalar_lea.sflag [#allocation5], %s419_s28 }
 0x303   : > { %p579_p5 = pnand %p585_p10, %p1082_p0 }
 0x305   : > { %765 = dma.done.wait (!%p579_p5), %s420_s12, 32  }
 0x306   : > { %767 = vsyncadd (!%p579_p5), %s420_s12, 4294967264  ;;  %s21_s20 = sadd.s32 1, %s790_s20   ;;  %s1083_s15 = smov %s774_s16 }
 0x307   : > { %p18_p9 = scmp.ge.s32.totalorder %s21_s20, 10   ;;  %s1084_s16 = smov %s778_s17 }
 0x308   : > { %s1085_s17 = smov %s931_s10  ;;  %s1086_s18 = smov %s786_s19 }
 0x309   : > { %s1087_s19 = smov %s1089_s5  ;;  %20 = sbr.rel (!%p18_p9) target bundleno = 7 (0x7), region = 92 }
 0x310   :  { %425 = vsyncpa [#allocation4], 1 }
 0x311   :  { %427 = vsyncpa [#allocation4 + $0x1], 1 }
 0x312   :  { %428 = vsyncpa [#allocation7], 1 }
 0x313   :  { %429 = vsyncpa [#allocation5], 1 }
 0x314   :  { %431 = vsyncpa [#allocation5 + $0x1], 1 }

</bundles_post_ra>
